<compile_context>
chip_gen: v7x
topology: tpu7x:2x2x1
jax: 0.10.0
libtpu: 0.0.40
codegen_flags: <defaults>
</compile_context>

<pallas_src>
import jax
import jax.numpy as jnp
import numpy as np
from jax.experimental import pallas as pl
from jax.experimental.pallas import tpu as pltpu  # noqa: F401  (TPU backend parity)

# ----------------------------- configuration -------------------------------
N           = 2      # batch
MAX_LEN     = 8      # max_len_enc
D_MODEL     = 32     # d_model_enc
LATENT_DIM  = 16
IN_FEATURES = MAX_LEN * D_MODEL   # 256


# ------------------------------ Pallas kernel -------------------------------
def _latent_kernel(x_ref, w_ref, b_ref, eps_ref, out_ref):
    """Fused (fc_mu | fc_var) single matmul + reparametrize, one packed store.

    x_ref:   [N, IN]        bf16
    w_ref:   [IN, 2L]       bf16   (W_mu | W_var packed along lanes)
    b_ref:   [1, 2L]        f32    (b_mu | b_var packed)
    eps_ref: [N, L]         f32
    out_ref: [N, 3L]        f32    (mu | log_var | z packed)
    """
    # One MXU matmul for both projections, f32 accumulation; bias rides on VPU.
    y = jnp.dot(x_ref[...], w_ref[...],
                preferred_element_type=jnp.float32) + b_ref[...]     # [N, 2L]
    mu = y[:, :LATENT_DIM]                                           # [N, L]
    lv = y[:, LATENT_DIM:]                                           # [N, L]
    std = jnp.exp(0.5 * lv)                                          # EUP
    z = eps_ref[...] * std + mu                                      # VPU FMA
    out_ref[...] = jnp.concatenate([y, z], axis=-1)                  # [N, 3L]


def latent_layer_pallas(src, params, eps):
    """src: [N, max_len, d_model] -> (mu, log_var, z), each [N, latent_dim]."""
    n = src.shape[0]
    x = src.reshape(n, -1).astype(jnp.bfloat16)   # torch.flatten(src, 1) + bf16 cast
    packed = pl.pallas_call(
        _latent_kernel,
        out_shape=jax.ShapeDtypeStruct((n, 3 * LATENT_DIM), jnp.float32),
        # no grid: all operands whole-array VMEM-resident (~18 KB total)
    )(x, params['w_packed'], params['b_packed'], eps)
    mu      = packed[:, :LATENT_DIM]
    log_var = packed[:, LATENT_DIM:2 * LATENT_DIM]
    z       = packed[:, 2 * LATENT_DIM:]
    return mu, log_var, z


# --------------------------- parameter construction -------------------------
def init_params(key, initrange=0.1):
    """Matches LatentLayer.init_weights: uniform(-0.1, 0.1) weights, zero bias.
    Weights stored pre-transposed [in_features, latent_dim] and packed
    W_mu|W_var along the output (lane) axis; biases packed the same way."""
    k_mu, k_var = jax.random.split(key)
    w_mu  = jax.random.uniform(k_mu,  (IN_FEATURES, LATENT_DIM),
                               jnp.float32, -initrange, initrange)
    w_var = jax.random.uniform(k_var, (IN_FEATURES, LATENT_DIM),
                               jnp.float32, -initrange, initrange)
    return {
        'w_packed': jnp.concatenate([w_mu, w_var], axis=1).astype(jnp.bfloat16),
        'b_packed': jnp.zeros((1, 2 * LATENT_DIM), jnp.float32),
    }


# ---------------------------- pure-JAX reference ----------------------------
def ref_forward(params, src, eps):
    # Same bf16-cast inputs + f32 accumulation as the kernel -> tight tolerance.
    x = src.reshape(src.shape[0], -1).astype(jnp.bfloat16)
    y = jnp.dot(x, params['w_packed'],
                preferred_element_type=jnp.float32) + params['b_packed']
    mu = y[:, :LATENT_DIM]
    lv = y[:, LATENT_DIM:]
    z = eps * jnp.exp(0.5 * lv) + mu
    return mu, lv, z


# ---------------------------------- main -------------------------------------
if __name__ == "__main__":
    key = jax.random.PRNGKey(0)
    k_params, k_src, k_eps = jax.random.split(key, 3)

    params = init_params(k_params)
    src = jax.random.normal(k_src, (N, MAX_LEN, D_MODEL), jnp.float32)
    eps = jax.random.normal(k_eps, (N, LATENT_DIM), jnp.float32)

    mu, log_var, z = latent_layer_pallas(src, params, eps)
    jax.block_until_ready((mu, log_var, z))

    mu_r, lv_r, z_r = ref_forward(params, src, eps)
    assert mu.shape == (N, LATENT_DIM)
    assert log_var.shape == (N, LATENT_DIM)
    assert z.shape == (N, LATENT_DIM)
    assert np.allclose(np.asarray(mu),      np.asarray(mu_r), atol=1e-4, rtol=1e-4)
    assert np.allclose(np.asarray(log_var), np.asarray(lv_r), atol=1e-4, rtol=1e-4)
    assert np.allclose(np.asarray(z),       np.asarray(z_r),  atol=1e-4, rtol=1e-4)

    print("KERNEL_OK")
</pallas_src>

<mosaic_0001>
module attributes {stable_mosaic.version = 11 : i64} {
  func.func @_latent_kernel(%arg0: memref<2x256xbf16, #tpu.memory_space<vmem>>, %arg1: memref<256x32xbf16, #tpu.memory_space<vmem>>, %arg2: memref<1x32xf32, #tpu.memory_space<vmem>>, %arg3: memref<2x16xf32, #tpu.memory_space<vmem>>, %arg4: memref<2x48xf32, #tpu.memory_space<vmem>>) attributes {dimension_semantics = [], scalar_prefetch = 0 : i64, scratch_operands = 0 : i64, tpu.core_type = #tpu.core_type<tc>} {
    %c0 = arith.constant 0 : index
    %c0_0 = arith.constant 0 : index
    %0 = vector.load %arg0[%c0, %c0_0] : memref<2x256xbf16, #tpu.memory_space<vmem>>, vector<2x256xbf16>
    %c0_1 = arith.constant 0 : index
    %c0_2 = arith.constant 0 : index
    %1 = vector.load %arg1[%c0_1, %c0_2] : memref<256x32xbf16, #tpu.memory_space<vmem>>, vector<256x32xbf16>
    %cst = arith.constant dense<0.000000e+00> : vector<2x32xf32>
    %2 = tpu.matmul %0, %1, %cst {dimension_numbers = #tpu.dot_dimension_numbers<[1], [0], [0], [1], [0, 0, 1, 1], [], []>} : vector<2x256xbf16>, vector<256x32xbf16>, vector<2x32xf32> -> vector<2x32xf32>
    %c0_3 = arith.constant 0 : index
    %c0_4 = arith.constant 0 : index
    %3 = vector.load %arg2[%c0_3, %c0_4] : memref<1x32xf32, #tpu.memory_space<vmem>>, vector<1x32xf32>
    %4 = vector.broadcast %3 : vector<1x32xf32> to vector<2x32xf32>
    %5 = arith.addf %2, %4 : vector<2x32xf32>
    %6 = vector.extract_strided_slice %5 {offsets = [0, 0], sizes = [2, 16], strides = [1, 1]} : vector<2x32xf32> to vector<2x16xf32>
    %7 = vector.extract_strided_slice %5 {offsets = [0, 16], sizes = [2, 16], strides = [1, 1]} : vector<2x32xf32> to vector<2x16xf32>
    %cst_5 = arith.constant 5.000000e-01 : f32
    %8 = vector.broadcast %cst_5 : f32 to vector<2x16xf32>
    %9 = arith.mulf %8, %7 : vector<2x16xf32>
    %10 = math.exp %9 : vector<2x16xf32>
    %c0_6 = arith.constant 0 : index
    %c0_7 = arith.constant 0 : index
    %11 = vector.load %arg3[%c0_6, %c0_7] : memref<2x16xf32, #tpu.memory_space<vmem>>, vector<2x16xf32>
    %12 = arith.mulf %11, %10 : vector<2x16xf32>
    %13 = arith.addf %12, %6 : vector<2x16xf32>
    %14 = tpu.concatenate %5, %13 in 1 : vector<2x32xf32>, vector<2x16xf32> -> vector<2x48xf32>
    %c0_8 = arith.constant 0 : index
    %c0_9 = arith.constant 0 : index
    %15 = vector.load %arg4[%c0_8, %c0_9] : memref<2x48xf32, #tpu.memory_space<vmem>>, vector<2x48xf32>
    tpu.vector_store %arg4[%c0_8, %c0_9], %14 {strides = array<i32>} : memref<2x48xf32, #tpu.memory_space<vmem>>, vector<2x48xf32>,
    return
  }
}

</mosaic_0001>

<bundles_post_ra>
// kernel: tpu_custom_call.1
= control target key start
LH: loop header
LB: loop body
LE: loop exit
PB: predicated region body
PF: predicated region fallthrough
CT: control target
= control target key end

     0   :  { %v71_v9 = vlaneseq  ;;  %v338_v13 = vmov 1966171168   ;;  %s436_s0 = inlined_call_operand.vmem [shape: bf16[2,256], index: 0, kind: input, shape index: {}]   ;;  %s437_s1 = inlined_call_operand.vmem [shape: bf16[256,32], index: 1, kind: input, shape index: {}]   ;;  %s438_s2 = inlined_call_operand.vmem [shape: f32[1,32], index: 2, kind: input, shape index: {}]   ;;  %s439_s3 = inlined_call_operand.vmem [shape: f32[2,16], index: 3, kind: input, shape index: {}]   ;;  %s440_s4 = inlined_call_operand.hbm [shape: f32[2,48], index: 4, kind: output, shape index: {}]  }
   0x1   :  { %v296_v0 = vld [vmem:[%s437_s1 + $0x40] sm:$0xff]   ;;  %v298_v2 = vld [vmem:[%s437_s1 + $0x48] sm:$0xff]   ;;  %v300_v4 = vld [vmem:[%s437_s1 + $0x50] sm:$0xff]   ;;  %v69_v14 = vunpack.c.l.s4 %v338_v13 }
   0x2   :  { %v297_v1 = vld [vmem:[%s437_s1] sm:$0xff]   ;;  %270 = vmatprep.subr.bf16.mxu0 %v296_v0  ;;  %v299_v3 = vld [vmem:[%s437_s1 + $0x8] sm:$0xff]   ;;  %v301_v5 = vld [vmem:[%s437_s1 + $0x10] sm:$0xff]   ;;  %v72_v15 = vshrl.u32 %v71_v9, 7 }
   0x3   :  { %271 = vmatpush3.bf16.msra.mxu0 %v297_v1  ;;  %v302_v6 = vld [vmem:[%s437_s1 + $0x58] sm:$0xff]   ;;  %v304_v8 = vld [vmem:[%s437_s1 + $0x60] sm:$0xff]   ;;  %v306_v11 = vld [vmem:[%s437_s1 + $0x68] sm:$0xff]  }
   0x4   :  { %272 = vmatprep.subr.bf16.mxu0 %v298_v2  ;;  %v303_v7 = vld [vmem:[%s437_s1 + $0x18] sm:$0xff]   ;;  %v305_v10 = vld [vmem:[%s437_s1 + $0x20] sm:$0xff]  }
   0x5   :  { %v253_v12 = vld.sshfl [vmem:[%s436_s0] sm:$0x11 pattern:$0x75316420] }
   0x7   :  { %273 = vmatpush3.bf16.msra.mxu0 %v299_v3 }
   0x8   :  { %274 = vmatprep.subr.bf16.mxu0 %v300_v4 }
   0xb   :  { %275 = vmatpush3.bf16.msra.mxu0 %v301_v5 }
   0xc   :  { %276 = vmatprep.subr.bf16.mxu0 %v302_v6 }
   0xf   :  { %277 = vmatpush3.bf16.msra.mxu0 %v303_v7 }
  0x10   :  { %278 = vmatprep.subr.bf16.mxu0 %v304_v8 }
  0x11   :  { %9 = vsyncpa [#allocation3], 0  ;;  %v307_v16 = vld [vmem:[%s437_s1 + $0x28] sm:$0xff]   ;;  %v67_v17 = vcombine.high %v253_v12, %v253_v12  ;;  %v70_v18 = vunpack.c.0.s8 %v69_v14  ;;  %v308_v19 = vld [vmem:[%s437_s1 + $0x70] sm:$0xff]   ;;  %s339_s24 = smov 112   ;;  %s340_s26 = smov 32  }
  0x12   :  { %v309_v21 = vld [vmem:[%s437_s1 + $0x30] sm:$0xff]   ;;  %v310_v23 = vld [vmem:[%s437_s1 + $0x78] sm:$0xff]   ;;  %v252_v27 = vld [vmem:[%s438_s2] ss:$0 sm:$0xff]  ;;  %s341_s2 = smov [#allocation2]   ;;  %vm234_vm0 = vcmask 261120  }
  0x13   :  { %279 = vmatpush3.bf16.msra.mxu0 %v305_v10  ;;  %v73_v20 = vsub.s32 %v70_v18, %v72_v15  ;;  %v311_v24 = vld [vmem:[%s437_s1 + $0x38] sm:$0xff]   ;;  %v223_v36 = vld [vmem:[%s439_s3] sm:$0x3]  ;;  %s244_s27 = sshll.u32 %s341_s2, 4  ;;  %vm236_vm1 = vcmask 386048   ;;  %s245_s27 = int_to_ptr.vmem [resolvable:$true] %s244_s27 }
  0x14   :  { %280 = vmatprep.subr.bf16.mxu0 %v306_v11  ;;  %s314_s28 = scalar_lea.vmem %s245_s27, 32  ;;  %p319_p1 = scmp.lt.s32.totalorder %s245_s27, %s245_s27 }
  0x15   :  { %v81_v22 = vrot.slane %v67_v17, %v73_v20  ;;  %v74_v25 = vrot.slane %v253_v12, %v73_v20  ;;  %p315_p0 = scmp.ne.s32.totalorder %s245_s27, %s314_s28  ;;  %p320_p2 = scmp.lt.s32.totalorder %s314_s28, %s314_s28 }
  0x17   :  { %281 = vmatpush3.bf16.msra.mxu0 %v307_v16  ;;  %212 = vmatprep.mubr.bf16.mxu0 %v81_v22  ;;  %p321_p3 = por %p320_p2, %p319_p1 }
  0x18   :  { %282 = vmatprep.subr.bf16.mxu0 %v308_v19 }
  0x19   :  { %p322_p4 = pnand %p321_p3, %p315_p0 }
  0x1b   :  { %283 = vmatpush3.bf16.msra.mxu0 %v309_v21 }
  0x1c   :  { %284 = vmatprep.subr.bf16.mxu0 %v310_v23 }
  0x1f   :  { %285 = vmatpush3.bf16.msra.mxu0 %v311_v24 }
  0x22   :  { %213 = vmatmul.mubr.bf16.vlgmr.msra.gmra.mrb[0].mxu0 %v74_v25 }
  0xf5   :  { %v286_v26 = vpop.f32.mrb[0].mxu0 }
  0xf6   :  { %v287_v28 = vpop.f32.mrb[1].mxu0 }
  0xf7   :  { %v288_v29 = vadd.f32 %v287_v28, %v286_v26  ;;  %v289_v30 = vpop.f32.mrb[2].mxu0 }
  0xf8   :  { %v290_v31 = vpop.f32.mrb[3].mxu0 }
  0xf9   :  { %v215_v32 = vadd.f32 %v288_v29, %v252_v27 }
  0xfb   :  { %v220_v33 = vmul.f32 0.5, %v215_v32 }
  0xfd   :  { %v221_v34 = vmul.f32 1.442695, %v220_v33 }
  0xff   :  { %312 = vpow2.f32 %v221_v34 }
 0x109   :  { %v313_v35 = vpop.eup %312 }
 0x10a   :  { %225 = vrot.lane.b32.xlu0 %v313_v35, %s339_s24 }
 0x17c   :  { %v226_v37 = vpop.permute.xlu0 %225 }
 0x17d   :  { %v228_v38 = vmul.f32 %v226_v37, %v223_v36 }
 0x17f   :  { %v229_v39 = vadd.f32 %v228_v38, %v215_v32 }
 0x181   :  { %231 = vrot.lane.b32.xlu0 %v229_v39, %s340_s26 }
 0x1f3   :  { %v232_v40 = vpop.permute.xlu0 %231 }
 0x1f4   :  { %v235_v41 = vsel %vm234_vm0, %v215_v32, %v232_v40 }
 0x1f5   :  { %237 = vst.msk [vmem:[#allocation2] sm:$0x3] %vm236_vm1, %v235_v41 }
 0x1f6   :  { %325 = shalt.err (!%p322_p4)
}
 0x1f7   :  { %s326_s30 = scalar_lea.hbm %s440_s4, 32 }
 0x1f8   :  { %p327_p5 = scmp.ne.s32.totalorder %s440_s4, %s326_s30  ;;  %p330_p6 = scmp.lt.u32.totalorder %s326_s30, %s440_s4 }
 0x1fa   :  { %p332_p7 = pnand %p330_p6, %p327_p5 }
 0x1fc   :  { %335 = shalt.err (!%p332_p7)
}
 0x1fd   :  { %247 = dma.vmem_to_hbm [thread:$0]  %s245_s27, 32, %s440_s4, [#allocation3]  }
 0x1fe   :  { %336 = dma.done.wait [#allocation3], 32  }
 0x1ff   :  { %337 = vsyncadd [#allocation3], 4294967264 }
 0x200   :  { %251 = vsyncpa [#allocation3], 1 }

</bundles_post_ra>
